<compile_context>
chip_gen: v7x
topology: tpu7x:2x2x1
jax: 0.10.0
libtpu: 0.0.40
codegen_flags: <defaults>
</compile_context>

<pallas_src>
import jax
import jax.numpy as jnp
from jax.experimental import pallas as pl
from jax.experimental.pallas import tpu as pltpu


def _round_up(x, m):
    return ((x + m - 1) // m) * m


def _classifier_kernel(u_ref, v_ref, w1_ref, b1_ref, w2_ref, b2_ref, out_ref):
    """Fused forward for one (TB, H) batch tile.

    features = cat(u, v, |u-v|, u*v) built along lanes -> single K=4H MXU dot.
    """
    u = u_ref[...]                      # (TB, H) f32
    v = v_ref[...]                      # (TB, H) f32

    feats = jnp.concatenate([u, v, jnp.abs(u - v), u * v], axis=-1)  # (TB, 4H)

    # hidden = features @ W1 + b1   (one MXU push, K = 4H)
    h = jnp.dot(feats, w1_ref[...], preferred_element_type=jnp.float32)
    h = h + b1_ref[...]                 # (1, H) broadcast over batch tile

    # logits = hidden @ W2_padded + b2_padded   (lane-dense Cp-wide output)
    logits = jnp.dot(h, w2_ref[...], preferred_element_type=jnp.float32)
    logits = logits + b2_ref[...]       # (1, Cp) broadcast

    out_ref[...] = logits.astype(out_ref.dtype)


def simple_classifier_forward(u, v, w1, b1, w2, b2, *, tb=256):
    """u, v: (B, H) f32. w1: (4H, H), b1: (H,), w2: (H, C), b2: (C,).

    Note: w1/w2 are stored input-major (transposed vs. torch nn.Linear.weight)
    so the kernel computes plain `x @ W + b`.
    """
    B, H = u.shape
    C = w2.shape[1]
    assert w1.shape == (4 * H, H)
    assert w2.shape[0] == H

    # --- batch tiling (multiple of 8 sublanes), pad batch so the grid divides.
    TB = min(tb, _round_up(B, 8))
    Bp = _round_up(B, TB)
    if Bp != B:
        pad = ((0, Bp - B), (0, 0))
        u = jnp.pad(u, pad)
        v = jnp.pad(v, pad)

    # --- lane-dense output: pad class dim to a multiple of 128 with zero columns.
    Cp = _round_up(C, 128)
    w2p = jnp.pad(w2, ((0, 0), (0, Cp - C))) if Cp != C else w2
    b2p = jnp.pad(b2, (0, Cp - C)) if Cp != C else b2

    b1_2d = b1.reshape(1, H)
    b2_2d = b2p.reshape(1, Cp)

    grid = (Bp // TB,)

    out = pl.pallas_call(
        _classifier_kernel,
        out_shape=jax.ShapeDtypeStruct((Bp, Cp), jnp.float32),
        grid=grid,
        in_specs=[
            pl.BlockSpec((TB, H), lambda i: (i, 0)),        # u     (batch-tiled)
            pl.BlockSpec((TB, H), lambda i: (i, 0)),        # v     (batch-tiled)
            pl.BlockSpec((4 * H, H), lambda i: (0, 0)),     # W1    (resident)
            pl.BlockSpec((1, H), lambda i: (0, 0)),         # b1    (resident)
            pl.BlockSpec((H, Cp), lambda i: (0, 0)),        # W2pad (resident)
            pl.BlockSpec((1, Cp), lambda i: (0, 0)),        # b2pad (resident)
        ],
        out_specs=pl.BlockSpec((TB, Cp), lambda i: (i, 0)),
        compiler_params=pltpu.CompilerParams(
            dimension_semantics=("parallel",),              # megacore on v7x
        ),
    )(u, v, w1, b1_2d, w2p, b2_2d)

    return out[:B, :C]


def reference_forward(u, v, w1, b1, w2, b2):
    feats = jnp.concatenate([u, v, jnp.abs(u - v), u * v], axis=-1)
    h = feats @ w1 + b1
    return h @ w2 + b2


if __name__ == "__main__":
    n_hidden = 32
    n_classes = 8
    batch = 2

    key = jax.random.PRNGKey(0)
    ku, kv, kw1, kb1, kw2, kb2 = jax.random.split(key, 6)

    u = jax.random.normal(ku, (batch, n_hidden), dtype=jnp.float32)
    v = jax.random.normal(kv, (batch, n_hidden), dtype=jnp.float32)

    # Deterministic parameter init (uniform, roughly torch Linear-style scale).
    in1 = 4 * n_hidden
    w1 = jax.random.uniform(kw1, (in1, n_hidden), jnp.float32,
                            minval=-1.0 / jnp.sqrt(in1), maxval=1.0 / jnp.sqrt(in1))
    b1 = jax.random.uniform(kb1, (n_hidden,), jnp.float32,
                            minval=-1.0 / jnp.sqrt(in1), maxval=1.0 / jnp.sqrt(in1))
    w2 = jax.random.uniform(kw2, (n_hidden, n_classes), jnp.float32,
                            minval=-1.0 / jnp.sqrt(n_hidden), maxval=1.0 / jnp.sqrt(n_hidden))
    b2 = jax.random.uniform(kb2, (n_classes,), jnp.float32,
                            minval=-1.0 / jnp.sqrt(n_hidden), maxval=1.0 / jnp.sqrt(n_hidden))

    logits = simple_classifier_forward(u, v, w1, b1, w2, b2)
    jax.block_until_ready(logits)

    ref = reference_forward(u, v, w1, b1, w2, b2)
    assert logits.shape == (batch, n_classes)
    assert jnp.allclose(logits, ref, atol=1e-4, rtol=1e-4)

    print("KERNEL_OK")
</pallas_src>

<mosaic_0001>
module attributes {stable_mosaic.version = 11 : i64} {
  func.func @_classifier_kernel(%arg0: i32, %arg1: memref<8x32xf32, #tpu.memory_space<vmem>>, %arg2: memref<8x32xf32, #tpu.memory_space<vmem>>, %arg3: memref<128x32xf32, #tpu.memory_space<vmem>>, %arg4: memref<1x32xf32, #tpu.memory_space<vmem>>, %arg5: memref<32x128xf32, #tpu.memory_space<vmem>>, %arg6: memref<1x128xf32, #tpu.memory_space<vmem>>, %arg7: memref<8x128xf32, #tpu.memory_space<vmem>>) attributes {dimension_semantics = [#tpu.dimension_semantics<parallel>], iteration_bounds = array<i64: 1>, scalar_prefetch = 0 : i64, scratch_operands = 0 : i64, tpu.core_type = #tpu.core_type<tc>, window_params = [{transform_indices = @transform_0, window_bounds = array<i64: 8, 32>}, {transform_indices = @transform_1, window_bounds = array<i64: 8, 32>}, {pipeline_mode = #tpu.pipeline_mode<synchronous>, transform_indices = @transform_2, window_bounds = array<i64: 128, 32>}, {pipeline_mode = #tpu.pipeline_mode<synchronous>, transform_indices = @transform_3, window_bounds = array<i64: 1, 32>}, {pipeline_mode = #tpu.pipeline_mode<synchronous>, transform_indices = @transform_4, window_bounds = array<i64: 32, 128>}, {pipeline_mode = #tpu.pipeline_mode<synchronous>, transform_indices = @transform_5, window_bounds = array<i64: 1, 128>}, {transform_indices = @transform_6, window_bounds = array<i64: 8, 128>}]} {
    %c0 = arith.constant 0 : index
    %c0_0 = arith.constant 0 : index
    %0 = vector.load %arg1[%c0, %c0_0] : memref<8x32xf32, #tpu.memory_space<vmem>>, vector<8x32xf32>
    %c0_1 = arith.constant 0 : index
    %c0_2 = arith.constant 0 : index
    %1 = vector.load %arg2[%c0_1, %c0_2] : memref<8x32xf32, #tpu.memory_space<vmem>>, vector<8x32xf32>
    %2 = arith.subf %0, %1 : vector<8x32xf32>
    %3 = math.absf %2 : vector<8x32xf32>
    %4 = arith.mulf %0, %1 : vector<8x32xf32>
    %5 = tpu.concatenate %0, %1, %3, %4 in 1 : vector<8x32xf32>, vector<8x32xf32>, vector<8x32xf32>, vector<8x32xf32> -> vector<8x128xf32>
    %c0_3 = arith.constant 0 : index
    %c0_4 = arith.constant 0 : index
    %6 = vector.load %arg3[%c0_3, %c0_4] : memref<128x32xf32, #tpu.memory_space<vmem>>, vector<128x32xf32>
    %cst = arith.constant dense<0.000000e+00> : vector<8x32xf32>
    %7 = tpu.matmul %5, %6, %cst {dimension_numbers = #tpu.dot_dimension_numbers<[1], [0], [0], [1], [0, 0, 1, 1], [], []>} : vector<8x128xf32>, vector<128x32xf32>, vector<8x32xf32> -> vector<8x32xf32>
    %c0_5 = arith.constant 0 : index
    %c0_6 = arith.constant 0 : index
    %8 = vector.load %arg4[%c0_5, %c0_6] : memref<1x32xf32, #tpu.memory_space<vmem>>, vector<1x32xf32>
    %9 = vector.broadcast %8 : vector<1x32xf32> to vector<8x32xf32>
    %10 = arith.addf %7, %9 : vector<8x32xf32>
    %c0_7 = arith.constant 0 : index
    %c0_8 = arith.constant 0 : index
    %11 = vector.load %arg5[%c0_7, %c0_8] : memref<32x128xf32, #tpu.memory_space<vmem>>, vector<32x128xf32>
    %cst_9 = arith.constant dense<0.000000e+00> : vector<8x128xf32>
    %12 = tpu.matmul %10, %11, %cst_9 {dimension_numbers = #tpu.dot_dimension_numbers<[1], [0], [0], [1], [0, 0, 1, 1], [], []>} : vector<8x32xf32>, vector<32x128xf32>, vector<8x128xf32> -> vector<8x128xf32>
    %c0_10 = arith.constant 0 : index
    %c0_11 = arith.constant 0 : index
    %13 = vector.load %arg6[%c0_10, %c0_11] : memref<1x128xf32, #tpu.memory_space<vmem>>, vector<1x128xf32>
    %14 = vector.broadcast %13 : vector<1x128xf32> to vector<8x128xf32>
    %15 = arith.addf %12, %14 : vector<8x128xf32>
    %c0_12 = arith.constant 0 : index
    %c0_13 = arith.constant 0 : index
    %16 = vector.load %arg7[%c0_12, %c0_13] : memref<8x128xf32, #tpu.memory_space<vmem>>, vector<8x128xf32>
    tpu.vector_store %arg7[%c0_12, %c0_13], %15 {strides = array<i32>} : memref<8x128xf32, #tpu.memory_space<vmem>>, vector<8x128xf32>,
    return
  }
  func.func @transform_0(%arg0: i32) -> (i32, i32) {
    %c0_i32 = arith.constant 0 : i32
    %c0_i32_0 = arith.constant 0 : i32
    return %arg0, %c0_i32 : i32, i32
  }
  func.func @transform_1(%arg0: i32) -> (i32, i32) {
    %c0_i32 = arith.constant 0 : i32
    %c0_i32_0 = arith.constant 0 : i32
    return %arg0, %c0_i32 : i32, i32
  }
  func.func @transform_2(%arg0: i32) -> (i32, i32) {
    %c0_i32 = arith.constant 0 : i32
    %c0_i32_0 = arith.constant 0 : i32
    %c0_i32_1 = arith.constant 0 : i32
    return %c0_i32, %c0_i32_0 : i32, i32
  }
  func.func @transform_3(%arg0: i32) -> (i32, i32) {
    %c0_i32 = arith.constant 0 : i32
    %c0_i32_0 = arith.constant 0 : i32
    %c0_i32_1 = arith.constant 0 : i32
    return %c0_i32, %c0_i32_0 : i32, i32
  }
  func.func @transform_4(%arg0: i32) -> (i32, i32) {
    %c0_i32 = arith.constant 0 : i32
    %c0_i32_0 = arith.constant 0 : i32
    %c0_i32_1 = arith.constant 0 : i32
    return %c0_i32, %c0_i32_0 : i32, i32
  }
  func.func @transform_5(%arg0: i32) -> (i32, i32) {
    %c0_i32 = arith.constant 0 : i32
    %c0_i32_0 = arith.constant 0 : i32
    %c0_i32_1 = arith.constant 0 : i32
    return %c0_i32, %c0_i32_0 : i32, i32
  }
  func.func @transform_6(%arg0: i32) -> (i32, i32) {
    %c0_i32 = arith.constant 0 : i32
    %c0_i32_0 = arith.constant 0 : i32
    return %arg0, %c0_i32 : i32, i32
  }
}

</mosaic_0001>

<bundles_post_ra>
// kernel: tpu_custom_call.1
= control target key start
LH: loop header
LB: loop body
LE: loop exit
PB: predicated region body
PF: predicated region fallthrough
CT: control target
= control target key end

     0   :  { %s371_s27 = smov 32   ;;  %v372_v5 = vmov 0.0|0.0   ;;  %s373_s8 = smov 96   ;;  %vm374_vm0 = vmmov 0   ;;  %v375_v11 = vmov 0.0   ;;  %s504_s0 = inlined_call_operand.vmem [shape: f32[8,32], index: 0, kind: input, shape index: {}]   ;;  %s505_s1 = inlined_call_operand.vmem [shape: f32[8,32], index: 1, kind: input, shape index: {}]   ;;  %s506_s2 = inlined_call_operand.vmem [shape: f32[128,32], index: 2, kind: input, shape index: {}]   ;;  %s507_s3 = inlined_call_operand.vmem [shape: f32[1,32], index: 3, kind: input, shape index: {}]   ;;  %s508_s4 = inlined_call_operand.vmem [shape: f32[32,128], index: 4, kind: input, shape index: {}]   ;;  %s509_s5 = inlined_call_operand.vmem [shape: f32[1,128], index: 5, kind: input, shape index: {}]   ;;  %s510_s6 = inlined_call_operand.hbm [shape: f32[8,128], index: 6, kind: output, shape index: {}]  }
   0x1   :  { %v25_v0 = vld [vmem:[%s505_s1] sm:$0xff]  ;;  %310 = vmatprep.subr.bf16.mxu0 %v372_v5  ;;  %v48_v6 = vld [vmem:[%s506_s2 + $0x8] sm:$0xff]  ;;  %v49_v7 = vld [vmem:[%s506_s2 + $0x10] sm:$0xff]  ;;  %334 = vmatprep.subr.bf16.mxu1 %v372_v5  ;;  %s376_s9 = smov 64  }
   0x2   :  { %v419_v1 = vld [vmem:[%s504_s0] sm:$0xff]  ;;  %30 = vrot.lane.b32.xlu0 %v25_v0, %s371_s27  ;;  %v50_v8 = vld [vmem:[%s506_s2 + $0x18] sm:$0xff]  ;;  %296 = vmatprep.mubr.msk.f32.mxu0 %vm374_vm0, %v375_v11  ;;  %v52_v14 = vld [vmem:[%s506_s2 + $0x28] sm:$0xff] }
   0x3   :  { %v47_v2 = vld [vmem:[%s506_s2] sm:$0xff]  ;;  %v26_v3 = vsub.f32 %v419_v1, %v25_v0  ;;  %v28_v4 = vmul.f32 %v25_v0, %v419_v1  ;;  %v314_v12 = vpack.c.bf16 %v50_v8, %v49_v7  ;;  %307 = vmatprep.mubr.msk.f32.mxu1 %vm374_vm0, %v375_v11  ;;  %v141_v16 = vld [vmem:[%s508_s4 + $0x8] sm:$0xff] }
   0x4   :  { %v311_v9 = vpack.c.bf16 %v48_v6, %v47_v2  ;;  %v51_v13 = vld [vmem:[%s506_s2 + $0x20] sm:$0xff] }
   0x5   :  { %v27_v10 = vand.u32 2147483647, %v26_v3  ;;  %38 = vrot.lane.b32.xlu1 %v28_v4, %s373_s8  ;;  %v140_v15 = vld [vmem:[%s508_s4] sm:$0xff] }
   0x6   :  { %312 = vmatpush3.bf16.msra.mxu0 %v311_v9  ;;  %v335_v17 = vpack.c.bf16 %v141_v16, %v140_v15 }
   0x7   :  { %34 = vrot.lane.b32.xlu0 %v27_v10, %s376_s9  ;;  %313 = vmatprep.subr.bf16.mxu0 %v372_v5 }
   0x8   :  { %11 = vsyncpa [#allocation3], 0  ;;  %v317_v18 = vpack.c.bf16 %v52_v14, %v51_v13  ;;  %v53_v19 = vld [vmem:[%s506_s2 + $0x30] sm:$0xff]  ;;  %v54_v20 = vld [vmem:[%s506_s2 + $0x38] sm:$0xff]  ;;  %336 = vmatpush3.bf16.msra.mxu1 %v335_v17  ;;  %vm41_vm1 = vcmask 261120   ;;  %vm43_vm2 = vcmask 523264  }
   0x9   :  { %337 = vmatprep.subr.bf16.mxu1 %v372_v5  ;;  %v320_v21 = vpack.c.bf16 %v54_v20, %v53_v19  ;;  %v55_v22 = vld [vmem:[%s506_s2 + $0x40] sm:$0xff]  ;;  %v56_v23 = vld [vmem:[%s506_s2 + $0x48] sm:$0xff]  ;;  %v57_v25 = vld [vmem:[%s506_s2 + $0x50] sm:$0xff]  ;;  %vm45_vm3 = vcmask 785408   ;;  %s377_s19 = smov [#allocation2]  }
   0xa   :  { %315 = vmatpush3.bf16.msra.mxu0 %v314_v12  ;;  %v323_v24 = vpack.c.bf16 %v56_v23, %v55_v22  ;;  %v58_v26 = vld [vmem:[%s506_s2 + $0x58] sm:$0xff]  ;;  %v59_v28 = vld [vmem:[%s506_s2 + $0x60] sm:$0xff]  ;;  %v60_v29 = vld [vmem:[%s506_s2 + $0x68] sm:$0xff]  ;;  %s231_s20 = sshll.u32 %s377_s19, 4  ;;  %s232_s20 = int_to_ptr.vmem [resolvable:$true] %s231_s20 }
   0xb   :  { %316 = vmatprep.subr.bf16.mxu0 %v372_v5  ;;  %v326_v27 = vpack.c.bf16 %v58_v26, %v57_v25  ;;  %v329_v30 = vpack.c.bf16 %v60_v29, %v59_v28  ;;  %v61_v31 = vld [vmem:[%s506_s2 + $0x70] sm:$0xff]  ;;  %v62_v32 = vld [vmem:[%s506_s2 + $0x78] sm:$0xff]  ;;  %v239_v43 = vld [vmem:[%s507_s3] ss:$0 sm:$0xff]  ;;  %p352_p1 = scmp.lt.s32.totalorder %s232_s20, %s232_s20 }
   0xc   :  { %v332_v33 = vpack.c.bf16 %v62_v32, %v61_v31  ;;  %v142_v40 = vld [vmem:[%s508_s4 + $0x10] sm:$0xff]  ;;  %v143_v41 = vld [vmem:[%s508_s4 + $0x18] sm:$0xff]  ;;  %v240_v47 = vld [vmem:[%s509_s5] ss:$0 sm:$0xff]  ;;  %s347_s4 = scalar_lea.vmem %s232_s20, 128 }
   0xd   :  { %v338_v42 = vpack.c.bf16 %v143_v41, %v142_v40  ;;  %p348_p0 = scmp.ne.s32.totalorder %s232_s20, %s347_s4  ;;  %p353_p2 = scmp.lt.s32.totalorder %s347_s4, %s347_s4 }
   0xe   :  { %318 = vmatpush3.bf16.msra.mxu0 %v317_v18 }
   0xf   :  { %319 = vmatprep.subr.bf16.mxu0 %v372_v5  ;;  %339 = vmatpush3.bf16.msra.mxu1 %v338_v42  ;;  %p354_p3 = por %p353_p2, %p352_p1 }
  0x11   :  { %p355_p4 = pnand %p354_p3, %p348_p0 }
  0x12   :  { %321 = vmatpush3.bf16.msra.mxu0 %v320_v21 }
  0x13   :  { %322 = vmatprep.subr.bf16.mxu0 %v372_v5 }
  0x16   :  { %324 = vmatpush3.bf16.msra.mxu0 %v323_v24 }
  0x17   :  { %325 = vmatprep.subr.bf16.mxu0 %v372_v5 }
  0x1a   :  { %327 = vmatpush3.bf16.msra.mxu0 %v326_v27 }
  0x1b   :  { %328 = vmatprep.subr.bf16.mxu0 %v372_v5 }
  0x1e   :  { %330 = vmatpush3.bf16.msra.mxu0 %v329_v30 }
  0x1f   :  { %331 = vmatprep.subr.bf16.mxu0 %v372_v5 }
  0x22   :  { %333 = vmatpush3.bf16.msra.mxu0 %v332_v33 }
  0x74   :  { %v31_v34 = vpop.permute.xlu0 %30 }
  0x75   :  { %v42_v36 = vsel %vm41_vm1, %v419_v1, %v31_v34 }
  0x77   :  { %v39_v35 = vpop.permute.xlu1 %38 }
  0x79   :  { %v35_v37 = vpop.permute.xlu0 %34 }
  0x7a   :  { %v44_v38 = vsel %vm43_vm2, %v42_v36, %v35_v37 }
  0x7b   :  { %v46_v39 = vsel %vm45_vm3, %v44_v38, %v39_v35 }
  0x7c   :  { %297 = vmatmul.mubr.f32.vlgmr.msra.gmra.mrb[0].mxu0 %v46_v39 }
 0x14f   :  { %v136_v44 = vpop.f32.mrb[0].mxu0 }
 0x150   :  { %v137_v45 = vadd.f32 %v239_v43, %v136_v44  ;;  %v298_v46 = vpop.f32.mrb[1].mxu0 }
 0x152   :  { %308 = vmatmul.mubr.msk.f32.vlgmr.msra.gmra.mrb[0].mxu1 %vm41_vm1, %v137_v45 }
 0x225   :  { %v220_v48 = vpop.f32.mrb[0].mxu1 }
 0x226   :  { %v221_v49 = vadd.f32 %v240_v47, %v220_v48  ;;  %v309_v50 = vpop.f32.mrb[1].mxu1 }
 0x228   :  { %224 = vst [vmem:[#allocation2] sm:$0xff] %v221_v49 }
 0x229   :  { %358 = shalt.err (!%p355_p4)
}
 0x22a   :  { %s359_s22 = scalar_lea.hbm %s510_s6, 128 }
 0x22b   :  { %p360_p5 = scmp.ne.s32.totalorder %s510_s6, %s359_s22  ;;  %p363_p6 = scmp.lt.u32.totalorder %s359_s22, %s510_s6 }
 0x22d   :  { %p365_p7 = pnand %p363_p6, %p360_p5 }
 0x22f   :  { %368 = shalt.err (!%p365_p7)
}
 0x230   :  { %234 = dma.vmem_to_hbm [thread:$0]  %s232_s20, 128, %s510_s6, [#allocation3]  }
 0x231   :  { %369 = dma.done.wait [#allocation3], 128  }
 0x232   :  { %370 = vsyncadd [#allocation3], 4294967168 }
 0x233   :  { %238 = vsyncpa [#allocation3], 1 }

</bundles_post_ra>
